<compile_context>
chip_gen: v7x
topology: tpu7x:2x2x1
jax: 0.10.0
libtpu: 0.0.40
codegen_flags: <defaults>
</compile_context>

<pallas_src>
import math

import jax
import jax.numpy as jnp
from jax.experimental import pallas as pl
from jax.experimental.pallas import tpu as pltpu


_CONV_UNROLL = 8  # bounded unroll of the tau loop (review: 4..8)


def _layer_norm(x, gamma, beta, eps=1e-5):
    # x: (M, D); gamma/beta: (1, D)
    mean = jnp.mean(x, axis=-1, keepdims=True)
    var = jnp.mean((x - mean) ** 2, axis=-1, keepdims=True)
    inv = jax.lax.rsqrt(var + eps)
    return (x - mean) * inv * gamma + beta


def _erf(x):
    # Abramowitz & Stegun 7.1.26 (|err| <= 1.5e-7): exp/mul/where only, so it
    # lowers cleanly in Mosaic.  The divide is routed to the EUP.
    a1, a2, a3, a4, a5 = (0.254829592, -0.284496736, 1.421413741,
                          -1.453152027, 1.061405429)
    p = 0.3275911
    s = jnp.where(x >= 0.0, 1.0, -1.0)
    ax = jnp.abs(x)
    t = pl.reciprocal(1.0 + p * ax, approx=True)
    poly = ((((a5 * t + a4) * t + a3) * t + a2) * t + a1) * t
    return s * (1.0 - poly * jnp.exp(-ax * ax))


def _gelu_exact(x):
    # Matches torch.nn.GELU() default (erf-based), not the tanh approximation.
    return 0.5 * x * (1.0 + _erf(x * (2.0 ** -0.5)))


def s4_ranker_kernel(
    x_ref,       # (M, D) bf16   embedded + sqrt(D)-rescaled tokens, M = TB*L
    tid_ref,     # (M, 1) int32  within-sequence time index of each row
    k_ref,       # (L, D) f32    SSM causal-conv kernel K[tau, d]
    k0d_ref,     # (1, D) f32    K[0] + D_skip (precomputed in the wrapper)
    ln1_g_ref,   # (1, D)
    ln1_b_ref,   # (1, D)
    wval_ref,    # (D, D) bf16   GLU value weight
    wgate_ref,   # (D, D) bf16   GLU gate weight
    bval_ref,    # (1, D)
    bgate_ref,   # (1, D)
    ln2_g_ref,   # (1, D)
    ln2_b_ref,   # (1, D)
    wproj_ref,   # (1, D)        projector weight (row layout)
    bproj_ref,   # (1, 1) f32 in SMEM
    out_ref,     # (M, 1) f32
):
    M, D = x_ref.shape
    L = k_ref.shape[0]

    # ---- widen streamed bf16 activations; S4Embedding rescale already folded ----
    x = x_ref[...].astype(jnp.float32)                         # (M, D)

    # ---- S4 block (pre-norm) ----
    z = _layer_norm(x, ln1_g_ref[...], ln1_b_ref[...])

    # Causal depthwise SSM convolution:
    #   conv[t, d] = sum_{tau<=t} K[tau, d] * z[t - tau, d]   (per sequence)
    # Rolled outer loop over groups of _CONV_UNROLL taus; inside a group every
    # roll is an independent static shift of the group base (no per-iteration
    # XLU chain); the causal mask also kills cross-sequence / wrap contributions.
    t_idx = tid_ref[...]                                       # (M, 1) int32
    conv0 = z * k0d_ref[...]                                   # tau=0 term + D*u skip

    if L > 1:
        U = min(_CONV_UNROLL, L - 1)
        num_groups = pl.cdiv(L - 1, U)

        def group_body(g, carry):
            conv, z_base = carry                               # z_base[r] = z[r - g*U]
            tau0 = g * U
            new_base = z_base
            for u in range(1, U + 1):                          # bounded static unroll
                z_tau = pltpu.roll(z_base, shift=u, axis=0)    # independent XLU rolls
                tau = tau0 + u
                k_row = k_ref[pl.ds(jnp.minimum(tau, L - 1), 1), :]   # (1, D)
                conv = conv + jnp.where(t_idx >= tau, z_tau, 0.0) * k_row
                if u == U:
                    new_base = z_tau                           # carry roll-by-U only
            return conv, new_base

        conv, _ = jax.lax.fori_loop(0, num_groups, group_body, (conv0, z))
    else:
        conv = conv0

    act = _gelu_exact(conv)

    # ---- GLU output linear: two lane-aligned (D, D) matmuls (bf16 on the MXU) ----
    act_bf = act.astype(jnp.bfloat16)
    val = jnp.dot(act_bf, wval_ref[...],
                  preferred_element_type=jnp.float32) + bval_ref[...]
    gate = jnp.dot(act_bf, wgate_ref[...],
                   preferred_element_type=jnp.float32) + bgate_ref[...]
    y = x + val * jax.nn.sigmoid(gate)                         # residual
    y = _layer_norm(y, ln2_g_ref[...], ln2_b_ref[...])

    # ---- projector Linear(d_model, 1): VPU multiply + lane reduction ----
    out_ref[...] = (jnp.sum(y * wproj_ref[...], axis=-1, keepdims=True)
                    + bproj_ref[0, 0])


def _vmem_capacity_bytes():
    try:
        return int(pltpu.get_tpu_info().vmem_capacity_bytes)
    except Exception:
        return 64 * 1024 * 1024        # conservative (v7x-sized) fallback


def _pick_tb_and_vmem(B, L, D, rows_target, vmem_cap_bytes):
    """Pick sequences-per-grid-step TB and a VMEM budget for the kernel."""
    # TB*L rows must be a multiple of 8 (sublane alignment of the (M, D) block).
    r = 8 // math.gcd(L, 8)
    # TB-independent bytes: resident weights (counted double-buffered in case the
    # Buffered(1) hint is not honoured) + Mosaic internal scratch headroom.
    fixed = 2 * (L * D * 4 + 2 * D * D * 2 + 10 * D * 4) + (2 << 20)
    # Per activation-row bytes: bf16 x block (x2 buffers), lane-padded f32 out
    # block (x2), time-index block, and ~12 live (rows, D) f32 temporaries
    # (x, z, conv, z_base, z_tau, act, val, gate, y, ...).
    per_row = 2 * (2 * D) + 2 * (128 * 4) + 128 * 4 + 12 * (4 * D)
    # Leave ~20% headroom below physical VMEM (v7x 64 MiB -> ~51 MiB budget,
    # v5e/v6e 128 MiB -> ~102 MiB budget).
    budget = int(0.80 * vmem_cap_bytes)
    max_rows = max(r * L, (budget - fixed) // max(1, per_row))
    tb = max(1, min(rows_target, max_rows) // L)
    if B >= 2:
        tb = min(tb, -(-B // 2))       # keep grid >= 2 (both v7x TensorCores busy)
    tb = max(r, (tb // r) * r)         # enforce 8-row alignment of TB*L
    need = fixed + per_row * tb * L
    vmem_limit = int(min(budget, max(need, 32 << 20)))
    return tb, vmem_limit


def s4_global_ranker(input_ids, params, *, rows_target=512):
    """input_ids: (B, L) int32.  Returns logits (B, L, 1) float32."""
    B, L = input_ids.shape
    emb = params["emb"]
    V, D = emb.shape

    # Embedding lookup as an XLA gather (the (V, D) table never enters VMEM);
    # sqrt(D) rescale folded into the table; activations streamed in bf16.
    x = jnp.take(emb * (float(D) ** 0.5), input_ids.astype(jnp.int32), axis=0)
    x = x.astype(jnp.bfloat16)                                  # (B, L, D)

    vmem_cap = _vmem_capacity_bytes()
    TB, vmem_limit = _pick_tb_and_vmem(B, L, D, rows_target, vmem_cap)
    B_pad = -(-B // TB) * TB
    if B_pad != B:
        x = jnp.pad(x, ((0, B_pad - B), (0, 0), (0, 0)))
    grid = (B_pad // TB,)
    M = TB * L

    # Flatten sequences to rows in the wrapper (free in XLA) so the kernel never
    # reshapes across tile boundaries.
    x2 = x.reshape(B_pad * L, D)
    t_ids = jnp.tile(jnp.arange(L, dtype=jnp.int32)[:, None], (TB, 1))   # (M, 1)
    k0d = params["K"][0:1, :] + params["Dskip"]                          # (1, D)

    # Constant-index-map blocks: no double-buffering (saves 4*D^2 bytes on the
    # two bf16 GLU weights alone — matters on v7x's 64 MiB VMEM).
    const = lambda shape: pl.BlockSpec(
        shape, lambda b: tuple(0 for _ in shape), pipeline_mode=pl.Buffered(1))

    in_specs = [
        pl.BlockSpec((M, D), lambda b: (b, 0)),           # embedded rows (pipelined)
        const((M, 1)),                                    # per-row time index
        const((L, D)),                                    # SSM conv kernel K
        const((1, D)),                                    # K[0] + D skip
        const((1, D)), const((1, D)),                     # ln1 gamma / beta
        const((D, D)), const((D, D)),                     # GLU value / gate weights
        const((1, D)), const((1, D)),                     # GLU value / gate biases
        const((1, D)), const((1, D)),                     # ln2 gamma / beta
        const((1, D)),                                    # projector weight row
        pl.BlockSpec(memory_space=pltpu.MemorySpace.SMEM),  # projector bias scalar
    ]
    out_spec = pl.BlockSpec((M, 1), lambda b: (b, 0))

    out = pl.pallas_call(
        s4_ranker_kernel,
        out_shape=jax.ShapeDtypeStruct((B_pad * L, 1), jnp.float32),
        grid=grid,
        in_specs=in_specs,
        out_specs=out_spec,
        compiler_params=pltpu.CompilerParams(
            dimension_semantics=("parallel",),
            vmem_limit_bytes=vmem_limit),
    )(
        x2, t_ids, params["K"], k0d,
        params["ln1_g"], params["ln1_b"],
        params["Wval"].astype(jnp.bfloat16), params["Wgate"].astype(jnp.bfloat16),
        params["bval"], params["bgate"],
        params["ln2_g"], params["ln2_b"],
        params["Wproj"], params["bproj"],
    )
    return out.reshape(B_pad, L, 1)[:B]


def make_params(key, n_tokens, d_model, seq_len, d_state=16):
    ks = jax.random.split(key, 7)
    V, D, L, N = n_tokens, d_model, seq_len, d_state

    # nn.Embedding init: normal(0, d_model ** -0.5)
    emb = jax.random.normal(ks[0], (V, D), jnp.float32) * (D ** -0.5)

    # S4D-real SSM parameters, ZOH discretization -> causal conv kernel K (L, D):
    #   A_bar = exp(dt*A); B_bar = (A_bar - 1)/A (B = 1);  K[l,h] = sum_n C B_bar A_bar^l
    A = -(0.5 + jnp.arange(N, dtype=jnp.float32))                 # (N,)
    log_dt = (jax.random.uniform(ks[1], (D,), jnp.float32)
              * (jnp.log(0.1) - jnp.log(0.001)) + jnp.log(0.001))
    dt = jnp.exp(log_dt)                                          # (D,)
    C = jax.random.normal(ks[2], (D, N), jnp.float32) * (N ** -0.5)
    dtA = dt[:, None] * A[None, :]                                # (D, N)
    B_bar = (jnp.exp(dtA) - 1.0) / A[None, :]                     # (D, N)
    l = jnp.arange(L, dtype=jnp.float32)                          # (L,)
    K = jnp.einsum("hn,hnl->lh", C * B_bar,
                   jnp.exp(dtA[:, :, None] * l[None, None, :]))   # (L, D)

    params = dict(
        emb=emb,
        K=K,
        Dskip=jax.random.normal(ks[3], (1, D), jnp.float32),
        ln1_g=jnp.ones((1, D), jnp.float32),
        ln1_b=jnp.zeros((1, D), jnp.float32),
        Wval=jax.random.normal(ks[4], (D, D), jnp.float32) * (D ** -0.5),
        Wgate=jax.random.normal(ks[5], (D, D), jnp.float32) * (D ** -0.5),
        bval=jnp.zeros((1, D), jnp.float32),
        bgate=jnp.zeros((1, D), jnp.float32),
        ln2_g=jnp.ones((1, D), jnp.float32),
        ln2_b=jnp.zeros((1, D), jnp.float32),
        Wproj=jax.random.normal(ks[6], (1, D), jnp.float32) * (D ** -0.5),
        bproj=jnp.zeros((1, 1), jnp.float32),
    )
    return params


if __name__ == "__main__":
    B, L, D, V = 2, 8, 32, 32   # batch, seq, d_model, n_tokens

    key = jax.random.PRNGKey(0)
    k_params, k_ids = jax.random.split(key)
    params = make_params(k_params, n_tokens=V, d_model=D, seq_len=L)
    input_ids = jax.random.randint(k_ids, (B, L), 0, V, dtype=jnp.int32)

    logits = s4_global_ranker(input_ids, params)
    jax.block_until_ready(logits)
    assert logits.shape == (B, L, 1) and logits.dtype == jnp.float32
    assert bool(jnp.all(jnp.isfinite(logits)))
    print("KERNEL_OK")
</pallas_src>

<mosaic_0001>
module attributes {stable_mosaic.version = 11 : i64} {
  func.func @s4_ranker_kernel(%arg0: i32, %arg1: memref<8x32xbf16, #tpu.memory_space<vmem>>, %arg2: memref<8x1xi32, #tpu.memory_space<vmem>>, %arg3: memref<8x32xf32, #tpu.memory_space<vmem>>, %arg4: memref<1x32xf32, #tpu.memory_space<vmem>>, %arg5: memref<1x32xf32, #tpu.memory_space<vmem>>, %arg6: memref<1x32xf32, #tpu.memory_space<vmem>>, %arg7: memref<32x32xbf16, #tpu.memory_space<vmem>>, %arg8: memref<32x32xbf16, #tpu.memory_space<vmem>>, %arg9: memref<1x32xf32, #tpu.memory_space<vmem>>, %arg10: memref<1x32xf32, #tpu.memory_space<vmem>>, %arg11: memref<1x32xf32, #tpu.memory_space<vmem>>, %arg12: memref<1x32xf32, #tpu.memory_space<vmem>>, %arg13: memref<1x32xf32, #tpu.memory_space<vmem>>, %arg14: memref<1x1xf32, #tpu.memory_space<smem>>, %arg15: memref<8x1xf32, #tpu.memory_space<vmem>>) attributes {dimension_semantics = [#tpu.dimension_semantics<parallel>], iteration_bounds = array<i64: 2>, scalar_prefetch = 0 : i64, scratch_operands = 0 : i64, tpu.core_type = #tpu.core_type<tc>, window_params = [{transform_indices = @transform_0, window_bounds = array<i64: 8, 32>}, {pipeline_mode = #tpu.pipeline_mode<synchronous>, transform_indices = @transform_1, window_bounds = array<i64: 8, 1>}, {pipeline_mode = #tpu.pipeline_mode<synchronous>, transform_indices = @transform_2, window_bounds = array<i64: 8, 32>}, {pipeline_mode = #tpu.pipeline_mode<synchronous>, transform_indices = @transform_3, window_bounds = array<i64: 1, 32>}, {pipeline_mode = #tpu.pipeline_mode<synchronous>, transform_indices = @transform_4, window_bounds = array<i64: 1, 32>}, {pipeline_mode = #tpu.pipeline_mode<synchronous>, transform_indices = @transform_5, window_bounds = array<i64: 1, 32>}, {pipeline_mode = #tpu.pipeline_mode<synchronous>, transform_indices = @transform_6, window_bounds = array<i64: 32, 32>}, {pipeline_mode = #tpu.pipeline_mode<synchronous>, transform_indices = @transform_7, window_bounds = array<i64: 32, 32>}, {pipeline_mode = #tpu.pipeline_mode<synchronous>, transform_indices = @transform_8, window_bounds = array<i64: 1, 32>}, {pipeline_mode = #tpu.pipeline_mode<synchronous>, transform_indices = @transform_9, window_bounds = array<i64: 1, 32>}, {pipeline_mode = #tpu.pipeline_mode<synchronous>, transform_indices = @transform_10, window_bounds = array<i64: 1, 32>}, {pipeline_mode = #tpu.pipeline_mode<synchronous>, transform_indices = @transform_11, window_bounds = array<i64: 1, 32>}, {pipeline_mode = #tpu.pipeline_mode<synchronous>, transform_indices = @transform_12, window_bounds = array<i64: 1, 32>}, {transform_indices = @transform_13, window_bounds = array<i64: 1, 1>}, {transform_indices = @transform_14, window_bounds = array<i64: 8, 1>}]} {
    %c0 = arith.constant 0 : index
    %c0_0 = arith.constant 0 : index
    %0 = vector.load %arg1[%c0, %c0_0] : memref<8x32xbf16, #tpu.memory_space<vmem>>, vector<8x32xbf16>
    %1 = arith.extf %0 : vector<8x32xbf16> to vector<8x32xf32>
    %c0_1 = arith.constant 0 : index
    %c0_2 = arith.constant 0 : index
    %2 = vector.load %arg5[%c0_1, %c0_2] : memref<1x32xf32, #tpu.memory_space<vmem>>, vector<1x32xf32>
    %c0_3 = arith.constant 0 : index
    %c0_4 = arith.constant 0 : index
    %3 = vector.load %arg6[%c0_3, %c0_4] : memref<1x32xf32, #tpu.memory_space<vmem>>, vector<1x32xf32>
    %cst = arith.constant dense<0.000000e+00> : vector<8xf32>
    %4 = vector.multi_reduction <add>, %1, %cst [1] : vector<8x32xf32> to vector<8xf32>
    %5 = vector.shape_cast %4 : vector<8xf32> to vector<8x1xf32>
    %cst_5 = arith.constant 3.200000e+01 : f32
    %6 = vector.broadcast %cst_5 : f32 to vector<8x1xf32>
    %7 = arith.divf %5, %6 : vector<8x1xf32>
    %8 = vector.broadcast %7 : vector<8x1xf32> to vector<8x32xf32>
    %9 = arith.subf %1, %8 : vector<8x32xf32>
    %10 = arith.mulf %9, %9 : vector<8x32xf32>
    %cst_6 = arith.constant dense<0.000000e+00> : vector<8xf32>
    %11 = vector.multi_reduction <add>, %10, %cst_6 [1] : vector<8x32xf32> to vector<8xf32>
    %12 = vector.shape_cast %11 : vector<8xf32> to vector<8x1xf32>
    %cst_7 = arith.constant 3.200000e+01 : f32
    %13 = vector.broadcast %cst_7 : f32 to vector<8x1xf32>
    %14 = arith.divf %12, %13 : vector<8x1xf32>
    %cst_8 = arith.constant 9.99999974E-6 : f32
    %15 = vector.broadcast %cst_8 : f32 to vector<8x1xf32>
    %16 = arith.addf %14, %15 : vector<8x1xf32>
    %17 = math.rsqrt %16 : vector<8x1xf32>
    %18 = vector.broadcast %7 : vector<8x1xf32> to vector<8x32xf32>
    %19 = arith.subf %1, %18 : vector<8x32xf32>
    %20 = vector.broadcast %17 : vector<8x1xf32> to vector<8x32xf32>
    %21 = arith.mulf %19, %20 : vector<8x32xf32>
    %22 = vector.broadcast %2 : vector<1x32xf32> to vector<8x32xf32>
    %23 = arith.mulf %21, %22 : vector<8x32xf32>
    %24 = vector.broadcast %3 : vector<1x32xf32> to vector<8x32xf32>
    %25 = arith.addf %23, %24 : vector<8x32xf32>
    %c0_9 = arith.constant 0 : index
    %c0_10 = arith.constant 0 : index
    %26 = vector.load %arg2[%c0_9, %c0_10] : memref<8x1xi32, #tpu.memory_space<vmem>>, vector<8x1xi32>
    %c0_11 = arith.constant 0 : index
    %c0_12 = arith.constant 0 : index
    %27 = vector.load %arg4[%c0_11, %c0_12] : memref<1x32xf32, #tpu.memory_space<vmem>>, vector<1x32xf32>
    %28 = vector.broadcast %27 : vector<1x32xf32> to vector<8x32xf32>
    %29 = arith.mulf %25, %28 : vector<8x32xf32>
    %c0_i32 = arith.constant 0 : i32
    %c7_i32 = arith.constant 7 : i32
    %30 = arith.muli %c0_i32, %c7_i32 : i32
    %c1_i32 = arith.constant 1 : i32
    %31 = tpu.dynamic_rotate %25 by %c1_i32 dim 0 : vector<8x32xf32>, i32 -> vector<8x32xf32>
    %c1_i32_13 = arith.constant 1 : i32
    %32 = arith.addi %30, %c1_i32_13 : i32
    %c7_i32_14 = arith.constant 7 : i32
    %33 = arith.minsi %32, %c7_i32_14 : i32
    %34 = arith.index_cast %33 : i32 to index
    %c0_15 = arith.constant 0 : index
    %35 = vector.load %arg3[%34, %c0_15] : memref<8x32xf32, #tpu.memory_space<vmem>>, vector<1x32xf32>
    %36 = vector.broadcast %32 : i32 to vector<8x1xi32>
    %37 = arith.cmpi sge, %26, %36 : vector<8x1xi32>
    %cst_16 = arith.constant 0.000000e+00 : f32
    %38 = vector.shape_cast %37 : vector<8x1xi1> to vector<8x1xi1>
    %39 = vector.broadcast %38 : vector<8x1xi1> to vector<8x32xi1>
    %40 = vector.broadcast %cst_16 : f32 to vector<8x32xf32>
    %41 = arith.select %39, %31, %40 : vector<8x32xi1>, vector<8x32xf32>
    %42 = vector.broadcast %35 : vector<1x32xf32> to vector<8x32xf32>
    %43 = arith.mulf %41, %42 : vector<8x32xf32>
    %44 = arith.addf %29, %43 : vector<8x32xf32>
    %c2_i32 = arith.constant 2 : i32
    %45 = tpu.dynamic_rotate %25 by %c2_i32 dim 0 : vector<8x32xf32>, i32 -> vector<8x32xf32>
    %c2_i32_17 = arith.constant 2 : i32
    %46 = arith.addi %30, %c2_i32_17 : i32
    %c7_i32_18 = arith.constant 7 : i32
    %47 = arith.minsi %46, %c7_i32_18 : i32
    %48 = arith.index_cast %47 : i32 to index
    %c0_19 = arith.constant 0 : index
    %49 = vector.load %arg3[%48, %c0_19] : memref<8x32xf32, #tpu.memory_space<vmem>>, vector<1x32xf32>
    %50 = vector.broadcast %46 : i32 to vector<8x1xi32>
    %51 = arith.cmpi sge, %26, %50 : vector<8x1xi32>
    %cst_20 = arith.constant 0.000000e+00 : f32
    %52 = vector.shape_cast %51 : vector<8x1xi1> to vector<8x1xi1>
    %53 = vector.broadcast %52 : vector<8x1xi1> to vector<8x32xi1>
    %54 = vector.broadcast %cst_20 : f32 to vector<8x32xf32>
    %55 = arith.select %53, %45, %54 : vector<8x32xi1>, vector<8x32xf32>
    %56 = vector.broadcast %49 : vector<1x32xf32> to vector<8x32xf32>
    %57 = arith.mulf %55, %56 : vector<8x32xf32>
    %58 = arith.addf %44, %57 : vector<8x32xf32>
    %c3_i32 = arith.constant 3 : i32
    %59 = tpu.dynamic_rotate %25 by %c3_i32 dim 0 : vector<8x32xf32>, i32 -> vector<8x32xf32>
    %c3_i32_21 = arith.constant 3 : i32
    %60 = arith.addi %30, %c3_i32_21 : i32
    %c7_i32_22 = arith.constant 7 : i32
    %61 = arith.minsi %60, %c7_i32_22 : i32
    %62 = arith.index_cast %61 : i32 to index
    %c0_23 = arith.constant 0 : index
    %63 = vector.load %arg3[%62, %c0_23] : memref<8x32xf32, #tpu.memory_space<vmem>>, vector<1x32xf32>
    %64 = vector.broadcast %60 : i32 to vector<8x1xi32>
    %65 = arith.cmpi sge, %26, %64 : vector<8x1xi32>
    %cst_24 = arith.constant 0.000000e+00 : f32
    %66 = vector.shape_cast %65 : vector<8x1xi1> to vector<8x1xi1>
    %67 = vector.broadcast %66 : vector<8x1xi1> to vector<8x32xi1>
    %68 = vector.broadcast %cst_24 : f32 to vector<8x32xf32>
    %69 = arith.select %67, %59, %68 : vector<8x32xi1>, vector<8x32xf32>
    %70 = vector.broadcast %63 : vector<1x32xf32> to vector<8x32xf32>
    %71 = arith.mulf %69, %70 : vector<8x32xf32>
    %72 = arith.addf %58, %71 : vector<8x32xf32>
    %c4_i32 = arith.constant 4 : i32
    %73 = tpu.dynamic_rotate %25 by %c4_i32 dim 0 : vector<8x32xf32>, i32 -> vector<8x32xf32>
    %c4_i32_25 = arith.constant 4 : i32
    %74 = arith.addi %30, %c4_i32_25 : i32
    %c7_i32_26 = arith.constant 7 : i32
    %75 = arith.minsi %74, %c7_i32_26 : i32
    %76 = arith.index_cast %75 : i32 to index
    %c0_27 = arith.constant 0 : index
    %77 = vector.load %arg3[%76, %c0_27] : memref<8x32xf32, #tpu.memory_space<vmem>>, vector<1x32xf32>
    %78 = vector.broadcast %74 : i32 to vector<8x1xi32>
    %79 = arith.cmpi sge, %26, %78 : vector<8x1xi32>
    %cst_28 = arith.constant 0.000000e+00 : f32
    %80 = vector.shape_cast %79 : vector<8x1xi1> to vector<8x1xi1>
    %81 = vector.broadcast %80 : vector<8x1xi1> to vector<8x32xi1>
    %82 = vector.broadcast %cst_28 : f32 to vector<8x32xf32>
    %83 = arith.select %81, %73, %82 : vector<8x32xi1>, vector<8x32xf32>
    %84 = vector.broadcast %77 : vector<1x32xf32> to vector<8x32xf32>
    %85 = arith.mulf %83, %84 : vector<8x32xf32>
    %86 = arith.addf %72, %85 : vector<8x32xf32>
    %c5_i32 = arith.constant 5 : i32
    %87 = tpu.dynamic_rotate %25 by %c5_i32 dim 0 : vector<8x32xf32>, i32 -> vector<8x32xf32>
    %c5_i32_29 = arith.constant 5 : i32
    %88 = arith.addi %30, %c5_i32_29 : i32
    %c7_i32_30 = arith.constant 7 : i32
    %89 = arith.minsi %88, %c7_i32_30 : i32
    %90 = arith.index_cast %89 : i32 to index
    %c0_31 = arith.constant 0 : index
    %91 = vector.load %arg3[%90, %c0_31] : memref<8x32xf32, #tpu.memory_space<vmem>>, vector<1x32xf32>
    %92 = vector.broadcast %88 : i32 to vector<8x1xi32>
    %93 = arith.cmpi sge, %26, %92 : vector<8x1xi32>
    %cst_32 = arith.constant 0.000000e+00 : f32
    %94 = vector.shape_cast %93 : vector<8x1xi1> to vector<8x1xi1>
    %95 = vector.broadcast %94 : vector<8x1xi1> to vector<8x32xi1>
    %96 = vector.broadcast %cst_32 : f32 to vector<8x32xf32>
    %97 = arith.select %95, %87, %96 : vector<8x32xi1>, vector<8x32xf32>
    %98 = vector.broadcast %91 : vector<1x32xf32> to vector<8x32xf32>
    %99 = arith.mulf %97, %98 : vector<8x32xf32>
    %100 = arith.addf %86, %99 : vector<8x32xf32>
    %c6_i32 = arith.constant 6 : i32
    %101 = tpu.dynamic_rotate %25 by %c6_i32 dim 0 : vector<8x32xf32>, i32 -> vector<8x32xf32>
    %c6_i32_33 = arith.constant 6 : i32
    %102 = arith.addi %30, %c6_i32_33 : i32
    %c7_i32_34 = arith.constant 7 : i32
    %103 = arith.minsi %102, %c7_i32_34 : i32
    %104 = arith.index_cast %103 : i32 to index
    %c0_35 = arith.constant 0 : index
    %105 = vector.load %arg3[%104, %c0_35] : memref<8x32xf32, #tpu.memory_space<vmem>>, vector<1x32xf32>
    %106 = vector.broadcast %102 : i32 to vector<8x1xi32>
    %107 = arith.cmpi sge, %26, %106 : vector<8x1xi32>
    %cst_36 = arith.constant 0.000000e+00 : f32
    %108 = vector.shape_cast %107 : vector<8x1xi1> to vector<8x1xi1>
    %109 = vector.broadcast %108 : vector<8x1xi1> to vector<8x32xi1>
    %110 = vector.broadcast %cst_36 : f32 to vector<8x32xf32>
    %111 = arith.select %109, %101, %110 : vector<8x32xi1>, vector<8x32xf32>
    %112 = vector.broadcast %105 : vector<1x32xf32> to vector<8x32xf32>
    %113 = arith.mulf %111, %112 : vector<8x32xf32>
    %114 = arith.addf %100, %113 : vector<8x32xf32>
    %c7_i32_37 = arith.constant 7 : i32
    %115 = tpu.dynamic_rotate %25 by %c7_i32_37 dim 0 : vector<8x32xf32>, i32 -> vector<8x32xf32>
    %c7_i32_38 = arith.constant 7 : i32
    %116 = arith.addi %30, %c7_i32_38 : i32
    %c7_i32_39 = arith.constant 7 : i32
    %117 = arith.minsi %116, %c7_i32_39 : i32
    %118 = arith.index_cast %117 : i32 to index
    %c0_40 = arith.constant 0 : index
    %119 = vector.load %arg3[%118, %c0_40] : memref<8x32xf32, #tpu.memory_space<vmem>>, vector<1x32xf32>
    %120 = vector.broadcast %116 : i32 to vector<8x1xi32>
    %121 = arith.cmpi sge, %26, %120 : vector<8x1xi32>
    %cst_41 = arith.constant 0.000000e+00 : f32
    %122 = vector.shape_cast %121 : vector<8x1xi1> to vector<8x1xi1>
    %123 = vector.broadcast %122 : vector<8x1xi1> to vector<8x32xi1>
    %124 = vector.broadcast %cst_41 : f32 to vector<8x32xf32>
    %125 = arith.select %123, %115, %124 : vector<8x32xi1>, vector<8x32xf32>
    %126 = vector.broadcast %119 : vector<1x32xf32> to vector<8x32xf32>
    %127 = arith.mulf %125, %126 : vector<8x32xf32>
    %128 = arith.addf %114, %127 : vector<8x32xf32>
    %c1_i32_42 = arith.constant 1 : i32
    %cst_43 = arith.constant 5.000000e-01 : f32
    %129 = vector.broadcast %cst_43 : f32 to vector<8x32xf32>
    %130 = arith.mulf %129, %128 : vector<8x32xf32>
    %cst_44 = arith.constant 0.707106769 : f32
    %131 = vector.broadcast %cst_44 : f32 to vector<8x32xf32>
    %132 = arith.mulf %128, %131 : vector<8x32xf32>
    %cst_45 = arith.constant 0.000000e+00 : f32
    %133 = vector.broadcast %cst_45 : f32 to vector<8x32xf32>
    %134 = arith.cmpf oge, %132, %133 : vector<8x32xf32>
    %cst_46 = arith.constant 1.000000e+00 : f32
    %cst_47 = arith.constant -1.000000e+00 : f32
    %135 = vector.broadcast %cst_46 : f32 to vector<8x32xf32>
    %136 = vector.broadcast %cst_47 : f32 to vector<8x32xf32>
    %137 = arith.select %134, %135, %136 : vector<8x32xi1>, vector<8x32xf32>
    %138 = math.absf %132 : vector<8x32xf32>
    %cst_48 = arith.constant 0.327591091 : f32
    %139 = vector.broadcast %cst_48 : f32 to vector<8x32xf32>
    %140 = arith.mulf %139, %138 : vector<8x32xf32>
    %cst_49 = arith.constant 1.000000e+00 : f32
    %141 = vector.broadcast %cst_49 : f32 to vector<8x32xf32>
    %142 = arith.addf %141, %140 : vector<8x32xf32>
    %143 = tpu.reciprocal %142 {approx = true} : vector<8x32xf32> -> vector<8x32xf32>
    %cst_50 = arith.constant 1.06140542 : f32
    %144 = vector.broadcast %cst_50 : f32 to vector<8x32xf32>
    %145 = arith.mulf %144, %143 : vector<8x32xf32>
    %cst_51 = arith.constant -1.45315206 : f32
    %146 = vector.broadcast %cst_51 : f32 to vector<8x32xf32>
    %147 = arith.addf %145, %146 : vector<8x32xf32>
    %148 = arith.mulf %147, %143 : vector<8x32xf32>
    %cst_52 = arith.constant 1.42141378 : f32
    %149 = vector.broadcast %cst_52 : f32 to vector<8x32xf32>
    %150 = arith.addf %148, %149 : vector<8x32xf32>
    %151 = arith.mulf %150, %143 : vector<8x32xf32>
    %cst_53 = arith.constant -0.284496725 : f32
    %152 = vector.broadcast %cst_53 : f32 to vector<8x32xf32>
    %153 = arith.addf %151, %152 : vector<8x32xf32>
    %154 = arith.mulf %153, %143 : vector<8x32xf32>
    %cst_54 = arith.constant 0.254829586 : f32
    %155 = vector.broadcast %cst_54 : f32 to vector<8x32xf32>
    %156 = arith.addf %154, %155 : vector<8x32xf32>
    %157 = arith.mulf %156, %143 : vector<8x32xf32>
    %cst_55 = arith.constant 0.000000e+00 : f32
    %158 = vector.broadcast %cst_55 : f32 to vector<8x32xf32>
    %159 = arith.subf %158, %138 : vector<8x32xf32>
    %160 = arith.mulf %159, %138 : vector<8x32xf32>
    %161 = math.exp %160 : vector<8x32xf32>
    %162 = arith.mulf %157, %161 : vector<8x32xf32>
    %cst_56 = arith.constant 1.000000e+00 : f32
    %163 = vector.broadcast %cst_56 : f32 to vector<8x32xf32>
    %164 = arith.subf %163, %162 : vector<8x32xf32>
    %165 = arith.mulf %137, %164 : vector<8x32xf32>
    %cst_57 = arith.constant 1.000000e+00 : f32
    %166 = vector.broadcast %cst_57 : f32 to vector<8x32xf32>
    %167 = arith.addf %166, %165 : vector<8x32xf32>
    %168 = arith.mulf %130, %167 : vector<8x32xf32>
    %169 = arith.truncf %168 : vector<8x32xf32> to vector<8x32xbf16>
    %c0_58 = arith.constant 0 : index
    %c0_59 = arith.constant 0 : index
    %170 = vector.load %arg7[%c0_58, %c0_59] : memref<32x32xbf16, #tpu.memory_space<vmem>>, vector<32x32xbf16>
    %cst_60 = arith.constant dense<0.000000e+00> : vector<8x32xf32>
    %171 = tpu.matmul %169, %170, %cst_60 {dimension_numbers = #tpu.dot_dimension_numbers<[1], [0], [0], [1], [0, 0, 1, 1], [], []>} : vector<8x32xbf16>, vector<32x32xbf16>, vector<8x32xf32> -> vector<8x32xf32>
    %c0_61 = arith.constant 0 : index
    %c0_62 = arith.constant 0 : index
    %172 = vector.load %arg9[%c0_61, %c0_62] : memref<1x32xf32, #tpu.memory_space<vmem>>, vector<1x32xf32>
    %173 = vector.broadcast %172 : vector<1x32xf32> to vector<8x32xf32>
    %174 = arith.addf %171, %173 : vector<8x32xf32>
    %c0_63 = arith.constant 0 : index
    %c0_64 = arith.constant 0 : index
    %175 = vector.load %arg8[%c0_63, %c0_64] : memref<32x32xbf16, #tpu.memory_space<vmem>>, vector<32x32xbf16>
    %cst_65 = arith.constant dense<0.000000e+00> : vector<8x32xf32>
    %176 = tpu.matmul %169, %175, %cst_65 {dimension_numbers = #tpu.dot_dimension_numbers<[1], [0], [0], [1], [0, 0, 1, 1], [], []>} : vector<8x32xbf16>, vector<32x32xbf16>, vector<8x32xf32> -> vector<8x32xf32>
    %c0_66 = arith.constant 0 : index
    %c0_67 = arith.constant 0 : index
    %177 = vector.load %arg10[%c0_66, %c0_67] : memref<1x32xf32, #tpu.memory_space<vmem>>, vector<1x32xf32>
    %178 = vector.broadcast %177 : vector<1x32xf32> to vector<8x32xf32>
    %179 = arith.addf %176, %178 : vector<8x32xf32>
    %180 = arith.negf %179 : vector<8x32xf32>
    %181 = math.exp %180 : vector<8x32xf32>
    %cst_68 = arith.constant 1.000000e+00 : f32
    %182 = vector.broadcast %cst_68 : f32 to vector<8x32xf32>
    %183 = arith.addf %182, %181 : vector<8x32xf32>
    %184 = arith.divf %182, %183 : vector<8x32xf32>
    %185 = arith.mulf %174, %184 : vector<8x32xf32>
    %186 = arith.addf %1, %185 : vector<8x32xf32>
    %c0_69 = arith.constant 0 : index
    %c0_70 = arith.constant 0 : index
    %187 = vector.load %arg11[%c0_69, %c0_70] : memref<1x32xf32, #tpu.memory_space<vmem>>, vector<1x32xf32>
    %c0_71 = arith.constant 0 : index
    %c0_72 = arith.constant 0 : index
    %188 = vector.load %arg12[%c0_71, %c0_72] : memref<1x32xf32, #tpu.memory_space<vmem>>, vector<1x32xf32>
    %cst_73 = arith.constant dense<0.000000e+00> : vector<8xf32>
    %189 = vector.multi_reduction <add>, %186, %cst_73 [1] : vector<8x32xf32> to vector<8xf32>
    %190 = vector.shape_cast %189 : vector<8xf32> to vector<8x1xf32>
    %cst_74 = arith.constant 3.200000e+01 : f32
    %191 = vector.broadcast %cst_74 : f32 to vector<8x1xf32>
    %192 = arith.divf %190, %191 : vector<8x1xf32>
    %193 = vector.broadcast %192 : vector<8x1xf32> to vector<8x32xf32>
    %194 = arith.subf %186, %193 : vector<8x32xf32>
    %195 = arith.mulf %194, %194 : vector<8x32xf32>
    %cst_75 = arith.constant dense<0.000000e+00> : vector<8xf32>
    %196 = vector.multi_reduction <add>, %195, %cst_75 [1] : vector<8x32xf32> to vector<8xf32>
    %197 = vector.shape_cast %196 : vector<8xf32> to vector<8x1xf32>
    %cst_76 = arith.constant 3.200000e+01 : f32
    %198 = vector.broadcast %cst_76 : f32 to vector<8x1xf32>
    %199 = arith.divf %197, %198 : vector<8x1xf32>
    %cst_77 = arith.constant 9.99999974E-6 : f32
    %200 = vector.broadcast %cst_77 : f32 to vector<8x1xf32>
    %201 = arith.addf %199, %200 : vector<8x1xf32>
    %202 = math.rsqrt %201 : vector<8x1xf32>
    %203 = vector.broadcast %192 : vector<8x1xf32> to vector<8x32xf32>
    %204 = arith.subf %186, %203 : vector<8x32xf32>
    %205 = vector.broadcast %202 : vector<8x1xf32> to vector<8x32xf32>
    %206 = arith.mulf %204, %205 : vector<8x32xf32>
    %207 = vector.broadcast %187 : vector<1x32xf32> to vector<8x32xf32>
    %208 = arith.mulf %206, %207 : vector<8x32xf32>
    %209 = vector.broadcast %188 : vector<1x32xf32> to vector<8x32xf32>
    %210 = arith.addf %208, %209 : vector<8x32xf32>
    %c0_78 = arith.constant 0 : index
    %c0_79 = arith.constant 0 : index
    %211 = vector.load %arg13[%c0_78, %c0_79] : memref<1x32xf32, #tpu.memory_space<vmem>>, vector<1x32xf32>
    %212 = vector.broadcast %211 : vector<1x32xf32> to vector<8x32xf32>
    %213 = arith.mulf %210, %212 : vector<8x32xf32>
    %cst_80 = arith.constant dense<0.000000e+00> : vector<8xf32>
    %214 = vector.multi_reduction <add>, %213, %cst_80 [1] : vector<8x32xf32> to vector<8xf32>
    %215 = vector.shape_cast %214 : vector<8xf32> to vector<8x1xf32>
    %c0_81 = arith.constant 0 : index
    %c0_82 = arith.constant 0 : index
    %216 = memref.load %arg14[%c0_81, %c0_82] : memref<1x1xf32, #tpu.memory_space<smem>>
    %217 = vector.broadcast %216 : f32 to vector<8x1xf32>
    %218 = arith.addf %215, %217 : vector<8x1xf32>
    %c0_83 = arith.constant 0 : index
    %c0_84 = arith.constant 0 : index
    %219 = vector.load %arg15[%c0_83, %c0_84] : memref<8x1xf32, #tpu.memory_space<vmem>>, vector<8x1xf32>
    tpu.vector_store %arg15[%c0_83, %c0_84], %218 {strides = array<i32>} : memref<8x1xf32, #tpu.memory_space<vmem>>, vector<8x1xf32>,
    return
  }
  func.func @transform_0(%arg0: i32) -> (i32, i32) {
    %c0_i32 = arith.constant 0 : i32
    %c0_i32_0 = arith.constant 0 : i32
    return %arg0, %c0_i32 : i32, i32
  }
  func.func @transform_1(%arg0: i32) -> (i32, i32) {
    %c0_i32 = arith.constant 0 : i32
    %c0_i32_0 = arith.constant 0 : i32
    %c0_i32_1 = arith.constant 0 : i32
    return %c0_i32, %c0_i32_0 : i32, i32
  }
  func.func @transform_2(%arg0: i32) -> (i32, i32) {
    %c0_i32 = arith.constant 0 : i32
    %c0_i32_0 = arith.constant 0 : i32
    %c0_i32_1 = arith.constant 0 : i32
    return %c0_i32, %c0_i32_0 : i32, i32
  }
  func.func @transform_3(%arg0: i32) -> (i32, i32) {
    %c0_i32 = arith.constant 0 : i32
    %c0_i32_0 = arith.constant 0 : i32
    %c0_i32_1 = arith.constant 0 : i32
    return %c0_i32, %c0_i32_0 : i32, i32
  }
  func.func @transform_4(%arg0: i32) -> (i32, i32) {
    %c0_i32 = arith.constant 0 : i32
    %c0_i32_0 = arith.constant 0 : i32
    %c0_i32_1 = arith.constant 0 : i32
    return %c0_i32, %c0_i32_0 : i32, i32
  }
  func.func @transform_5(%arg0: i32) -> (i32, i32) {
    %c0_i32 = arith.constant 0 : i32
    %c0_i32_0 = arith.constant 0 : i32
    %c0_i32_1 = arith.constant 0 : i32
    return %c0_i32, %c0_i32_0 : i32, i32
  }
  func.func @transform_6(%arg0: i32) -> (i32, i32) {
    %c0_i32 = arith.constant 0 : i32
    %c0_i32_0 = arith.constant 0 : i32
    %c0_i32_1 = arith.constant 0 : i32
    return %c0_i32, %c0_i32_0 : i32, i32
  }
  func.func @transform_7(%arg0: i32) -> (i32, i32) {
    %c0_i32 = arith.constant 0 : i32
    %c0_i32_0 = arith.constant 0 : i32
    %c0_i32_1 = arith.constant 0 : i32
    return %c0_i32, %c0_i32_0 : i32, i32
  }
  func.func @transform_8(%arg0: i32) -> (i32, i32) {
    %c0_i32 = arith.constant 0 : i32
    %c0_i32_0 = arith.constant 0 : i32
    %c0_i32_1 = arith.constant 0 : i32
    return %c0_i32, %c0_i32_0 : i32, i32
  }
  func.func @transform_9(%arg0: i32) -> (i32, i32) {
    %c0_i32 = arith.constant 0 : i32
    %c0_i32_0 = arith.constant 0 : i32
    %c0_i32_1 = arith.constant 0 : i32
    return %c0_i32, %c0_i32_0 : i32, i32
  }
  func.func @transform_10(%arg0: i32) -> (i32, i32) {
    %c0_i32 = arith.constant 0 : i32
    %c0_i32_0 = arith.constant 0 : i32
    %c0_i32_1 = arith.constant 0 : i32
    return %c0_i32, %c0_i32_0 : i32, i32
  }
  func.func @transform_11(%arg0: i32) -> (i32, i32) {
    %c0_i32 = arith.constant 0 : i32
    %c0_i32_0 = arith.constant 0 : i32
    %c0_i32_1 = arith.constant 0 : i32
    return %c0_i32, %c0_i32_0 : i32, i32
  }
  func.func @transform_12(%arg0: i32) -> (i32, i32) {
    %c0_i32 = arith.constant 0 : i32
    %c0_i32_0 = arith.constant 0 : i32
    %c0_i32_1 = arith.constant 0 : i32
    return %c0_i32, %c0_i32_0 : i32, i32
  }
  func.func @transform_13(%arg0: i32) -> (i32, i32) {
    %c0_i32 = arith.constant 0 : i32
    %c0_i32_0 = arith.constant 0 : i32
    %c0_i32_1 = arith.constant 0 : i32
    return %c0_i32, %c0_i32_0 : i32, i32
  }
  func.func @transform_14(%arg0: i32) -> (i32, i32) {
    %c0_i32 = arith.constant 0 : i32
    %c0_i32_0 = arith.constant 0 : i32
    return %arg0, %c0_i32 : i32, i32
  }
}

</mosaic_0001>

<bundles_post_ra>
// kernel: tpu_custom_call.1
= control target key start
LH: loop header
LB: loop body
LE: loop exit
PB: predicated region body
PF: predicated region fallthrough
CT: control target
= control target key end

     0   :  { %s1438_s0 = inlined_call_operand.hbm [shape: bf16[16,32], index: 0, kind: input, shape index: {}]   ;;  %s1439_s1 = inlined_call_operand.vmem [shape: s32[8,1], index: 1, kind: input, shape index: {}]   ;;  %s1440_s2 = inlined_call_operand.hbm [shape: f32[8,32], index: 2, kind: input, shape index: {}]   ;;  %s1441_s3 = inlined_call_operand.vmem [shape: f32[1,32], index: 3, kind: input, shape index: {}]   ;;  %s1442_s4 = inlined_call_operand.vmem [shape: f32[1,32], index: 4, kind: input, shape index: {}]   ;;  %s1443_s5 = inlined_call_operand.vmem [shape: f32[1,32], index: 5, kind: input, shape index: {}]   ;;  %s1444_s6 = inlined_call_operand.vmem [shape: bf16[32,32], index: 6, kind: input, shape index: {}]   ;;  %s1445_s7 = inlined_call_operand.vmem [shape: bf16[32,32], index: 7, kind: input, shape index: {}]   ;;  %s1446_s8 = inlined_call_operand.vmem [shape: f32[1,32], index: 8, kind: input, shape index: {}]   ;;  %s1447_s9 = inlined_call_operand.vmem [shape: f32[1,32], index: 9, kind: input, shape index: {}]   ;;  %s1448_s10 = inlined_call_operand.vmem [shape: f32[1,32], index: 10, kind: input, shape index: {}]   ;;  %s1449_s11 = inlined_call_operand.vmem [shape: f32[1,32], index: 11, kind: input, shape index: {}]   ;;  %s1450_s12 = inlined_call_operand.vmem [shape: f32[1,32], index: 12, kind: input, shape index: {}]   ;;  %s1451_s13 = inlined_call_operand.<no memory space> [shape: f32[1,1], index: 13, kind: input, shape index: {}]   ;;  %s1452_s14 = inlined_call_operand.vmem [shape: f32[16,1], index: 14, kind: output, shape index: {}]  }
   0x1   :  { %1458 = sst [smem:[#allocation10_spill]] %s1440_s2 }
   0x2   :  { %1459 = sst [smem:[#allocation11_spill]] %s1452_s14 }
   0x3   :  { %19 = sst [smem:[#allocation2]] %s1451_s13 }
   0x4   :  { %20 = vsyncpa [#allocation4], 0 }
   0x5   :  { %22 = vsyncpa [#allocation4 + $0x1], 0 }
   0x6   :  { %23 = vsyncpa [#allocation6], 0  ;;  %s1239_s15 = smov 0   ;;  %s1241_s16 = smov 0  }
   0x7   :  { %s1243_s17 = smov 0   ;;  %s1245_s18 = smov 0  }
   0x8 LB: > { %s1258_s13 = sadd.s32 4294967295, %s1153_s18   ;;  %p49_p0 = scmp.ne.s32.totalorder %s1145_s16, %s1141_s15  ;;  %s1153_s18 = sphi %s1245_s18, %s1474_s18   ;;  %s1149_s17 = sphi %s1243_s17, %s1477_s17   ;;  %s1145_s16 = sphi %s1241_s16, %s1476_s16   ;;  %s1141_s15 = sphi %s1239_s15, %s1475_s15  }
   0x9   : > { %p1455_p1 = scmp.eq.s32.totalorder %s1258_s13, 0  ;;  %p930_p2 = scmp.ge.s32.totalorder %s1153_s18, 1 }
   0xa   : > { %p359_p3 = scmp.lt.s32.totalorder %s1153_s18, 3  ;;  %s1155_s21 = smov [#allocation5]  }
   0xb   : > { %p1266_p4 = por %p1455_p1, %p49_p0  ;;  %s375_s22 = sshll.u32 %s1155_s21, 4  ;;  %s376_s22 = int_to_ptr.vmem [resolvable:$true] %s375_s22 }
   0xc   : > { %p1270_p5 = pnand %p930_p2, %p359_p3  ;;  %s1277_s23 = sadd.s32 1, %s1153_s18  }
   0xd   : > { %s1460_s19 = scalar_select %p1266_p4, 1, 0 }
   0xe   : > { %s1461_s20 = scalar_select %p1270_p5, 1, 0 }
   0xf   : > { %p991_p6 = pneg %p1270_p5  ;;  %1462 = sst [smem:[#allocation9_spill]] %s1277_s23 }
  0x10   : > { %s33_s25 = ssub.s32 %s1153_s18, %s1277_s23  ;;  %s36_s27 = sadd.s32 1, %s1149_s17 }
  0x11   : > { %p1281_p7 = pnand %p991_p6, %p1455_p1  ;;  %p1287_p8 = scmp.eq.s32.totalorder %s33_s25, 0 }
  0x12   : > { %s1465_s2 = sld [smem:[#allocation10_spill]] }
  0x13   : > { %s1464_s26 = scalar_select %p1287_p8, 1, 0 }
  0x14   : > { %p1059_p11 = pneg %p1281_p7 }
  0x18   : > { %s1057_s30 = scalar_lea.hbm %s1465_s2, 128 }
  0x19   : > { %p1058_p10 = scmp.ne.s32.totalorder %s1465_s2, %s1057_s30  ;;  %p1064_p0 = scmp.lt.u32.totalorder %s1057_s30, %s1465_s2 }
  0x1b   : > { %p1060_p12 = pnand %p1059_p11, %p1058_p10 }
  0x1d   : > { %p1061_p13 = pneg %p1060_p12 }
  0x1f   : > { %p1066_p2 = pnand %p1064_p0, %p1061_p13 }
  0x21   : > { %1069 = shalt.err (!%p1066_p2)
}
  0x22   : > { %s1070_s25 = scalar_lea.vmem %s376_s22, 128  ;;  %p1078_p9 = scmp.lt.s32.totalorder %s376_s22, %s376_s22 }
  0x23   : > { %p1071_p3 = scmp.ne.s32.totalorder %s376_s22, %s1070_s25  ;;  %p1079_p4 = scmp.lt.s32.totalorder %s1070_s25, %s1070_s25 }
  0x25   : > { %p1073_p6 = pnand %p1071_p3, %p1059_p11  ;;  %p1080_p5 = por %p1079_p4, %p1078_p9 }
  0x27   : > { %p1074_p1 = pneg %p1073_p6 }
  0x29   : > { %p1081_p8 = pnand %p1080_p5, %p1074_p1 }
  0x2b   : > { %1084 = shalt.err (!%p1081_p8)
}
  0x2c   : > { %994 = dma.hbm_to_vmem [thread:$0]  (!%p1281_p7), %s1465_s2, 128, %s376_s22, [#allocation6]  }
  0x2d   : > { %p1466_p10 = scmp.ne.s32.totalorder %s1464_s26, 0  ;;  %p44_p4 = scmp.eq.s32.totalorder %s1153_s18, 0 }
  0x2e   : > { %p1000_p1 = scmp.lt.s32.totalorder %s1153_s18, 2  ;;  %s419_s23 = sand.u32 1, %s1149_s17  }
  0x2f   : > { %s1313_s14 = scalar_select %p1466_p10, %s1149_s17, %s36_s27  }
  0x30   : > { %s934_s30 = sshll.u32 %s1153_s18, 6  ;;  %p1467_p5 = scmp.ne.s32.totalorder %s1149_s17, %s1145_s16 }
  0x31   : > { %s933_s24 = sshll.u32 %s419_s23, 2  ;;  %s1325_s25 = scalar_lea.hbm %s1438_s0, %s934_s30 }
  0x32   : > { %p45_p8 = por %p44_p4, %p1467_p5  ;;  %s423_s26 = scalar_lea.vmem [#allocation3], %s933_s24 }
  0x33   : > { %s430_s18 = sshll.u32 %s423_s26, 4  ;;  %s420_s27 = scalar_lea.sflag [#allocation4], %s419_s23  ;;  %s1331_s18 = int_to_ptr.vmem [resolvable:$true] %s430_s18 }
  0x34   : > { %p1327_p7 = pnand %p1000_p1, %p45_p8  ;;  %s1085_s28 = scalar_lea.hbm %s1325_s25, 64 }
  0x35   : > { %p1086_p9 = scmp.ne.s32.totalorder %s1325_s25, %s1085_s28  ;;  %s1090_s15 = scalar_lea.hbm %s1438_s0, 128 }
  0x36   : > { %p1087_p11 = pneg %p1327_p7  ;;  %p1091_p0 = scmp.lt.u32.totalorder %s1325_s25, %s1438_s0 }
  0x37   : > { %p1092_p2 = scmp.lt.u32.totalorder %s1090_s15, %s1085_s28  ;;  %p1094_p6 = scmp.lt.u32.totalorder %s1085_s28, %s1325_s25 }
  0x38   : > { %p1088_p12 = pnand %p1087_p11, %p1086_p9 }
  0x39   : > { %p1093_p3 = por %p1092_p2, %p1091_p0 }
  0x3a   : > { %p1089_p13 = pneg %p1088_p12 }
  0x3b   : > { %p1095_p10 = por %p1094_p6, %p1093_p3 }
  0x3d   : > { %p1096_p4 = pnand %p1095_p10, %p1089_p13 }
  0x3f   : > { %1099 = shalt.err (!%p1096_p4)
}
  0x40   : > { %s1100_s23 = scalar_lea.vmem %s1331_s18, 64  ;;  %s1156_s24 = smov [#allocation3]  }
  0x41   : > { %p1101_p1 = scmp.ne.s32.totalorder %s1331_s18, %s1100_s23  ;;  %s1105_s26 = sshll.u32 %s1156_s24, 4  ;;  %s1106_s26 = int_to_ptr.vmem [resolvable:$false] %s1105_s26 }
  0x42   : > { %s1107_s2 = scalar_lea.vmem %s1106_s26, 128  ;;  %p1108_p9 = scmp.lt.s32.totalorder %s1331_s18, %s1106_s26 }
  0x43   : > { %p1103_p5 = pnand %p1101_p1, %p1087_p11  ;;  %p1109_p12 = scmp.lt.s32.totalorder %s1107_s2, %s1100_s23 }
  0x45   : > { %p1104_p8 = pneg %p1103_p5  ;;  %p1110_p0 = por %p1109_p12, %p1108_p9 }
  0x47   : > { %p1111_p2 = pnand %p1110_p0, %p1104_p8 }
  0x49   : > { %1114 = shalt.err (!%p1111_p2)
}
  0x4a   : > { %998 = dma.hbm_to_vmem [thread:$0]  (!%p1327_p7), %s1325_s25, 64, %s1331_s18, %s420_s27  }
  0x4b   : > { %p1469_p13 = scmp.ne.s32.totalorder %s1461_s20, 0 }
  0x4c   : > { %s441_s28 = sand.u32 (!%p1469_p13), 1, %s1145_s16   ;;  %p1470_p11 = scmp.ne.s32.totalorder (!%p1469_p13), %s1460_s19, 0 }
  0x4d   : > { %439 = sbr.rel (%p1469_p13) target bundleno = 1177 (0x499), region = 76  ;;  %s936_s29 = sshll.u32 (!%p1469_p13), %s441_s28, 2 }
  0x4e   : > { %s442_s30 = scalar_lea.sflag (!%p1469_p13), [#allocation4], %s441_s28  ;;  %s445_s15 = scalar_lea.vmem (!%p1469_p13), [#allocation3], %s936_s29 }
  0x54   : > { %1132 = dma.done.wait (%p1470_p11), %s442_s30, 64  }
  0x55   : > { %1134 = vsyncadd (%p1470_p11), %s442_s30, 4294967232  ;;  %p1471_p3 = scmp.eq.s32.totalorder %s1258_s13, 0 }
  0x57   : > { %1136 = dma.done.wait (%p1471_p3), [#allocation6], 128   ;;  %p1472_p6 = pmov %p1471_p3 }
  0x58   : > { %vm502_vm0 = vcmask 261120   ;;  %v498_v0 = vld [vmem:[%s445_s15] sm:$0xf]  ;;  %v1157_v4 = vmov 0   ;;  %v1158_v19 = vmov 0.0   ;;  %v1043_v20 = vld [vmem:[%s1444_s6 + $0x8] sm:$0xff]  }
  0x59   : > { %1138 = vsyncadd (%p1472_p6), [#allocation6], 4294967168  ;;  %v1369_v1 = vunpack.c.l.bf16 %v498_v0  ;;  %v531_v3 = vld [vmem:[%s1439_s1] sm:$0xff]  ;;  %1039 = vset.pattern.permute.xlu1 %v1157_v4  ;;  %1040 = vset.pattern.permute.xlu0 %v1157_v4  ;;  %v1044_v21 = vld [vmem:[%s1445_s7 + $0x8] sm:$0xff]   ;;  %vm1159_vm8 = vmmov 0   ;;  %p493_p7 = scmp.lt.s32.totalorder %s1258_s13, 1 }
  0x5a   : > { %vm542_vm1 = vcmp.ge.s32.totalorder %v531_v3, 1  ;;  %vm557_vm2 = vcmp.ge.s32.totalorder %v531_v3, 2  ;;  %vm572_vm3 = vcmp.ge.s32.totalorder %v531_v3, 3  ;;  %vm587_vm4 = vcmp.ge.s32.totalorder %v531_v3, 4  ;;  %v1041_v17 = vld [vmem:[%s1444_s6] sm:$0xff]   ;;  %969 = vmatprep.subr.bf16.mxu0 %v1158_v19  ;;  %977 = vmatprep.subr.bf16.mxu1 %v1158_v19  ;;  %s849_s28 = sld [smem:[#allocation2]] }
  0x5b   : > { %v503_v2 = vsel %vm502_vm0, %v1369_v1, 0.0  ;;  %v543_v5 = vsel %vm542_vm1, 1, %v1157_v4  ;;  %v558_v6 = vsel %vm557_vm2, 1, %v1157_v4  ;;  %v573_v7 = vsel %vm572_vm3, 1, %v1157_v4  ;;  %v1042_v18 = vld [vmem:[%s1445_s7] sm:$0xff]   ;;  %970 = vmatpush3.bf16.msra.mxu0 %v1041_v17  ;;  %973 = vmatprep.mubr.msk.bf16.mxu0 %vm1159_vm8, %v1158_v19  ;;  %s1479_s13 = smov (!%p493_p7, %s1258_s13), 1 }
  0x5c   : > { %504 = vadd.xlane.f32.xlu0 %v503_v2  ;;  %545 = vperm.xlu1 %1039, %v543_v5   ;;  %v588_v8 = vsel %vm587_vm4, 1, %v1157_v4  ;;  %vm602_vm5 = vcmp.ge.s32.totalorder %v531_v3, 5  ;;  %vm617_vm6 = vcmp.ge.s32.totalorder %v531_v3, 6  ;;  %vm632_vm7 = vcmp.ge.s32.totalorder %v531_v3, 7  ;;  %v939_v29 = vld [vmem:[%s1442_s4] ss:$0 sm:$0xff] }
  0x5d   : > { %v603_v9 = vsel %vm602_vm5, 1, %v1157_v4  ;;  %v618_v10 = vsel %vm617_vm6, 1, %v1157_v4  ;;  %v633_v11 = vsel %vm632_vm7, 1, %v1157_v4  ;;  %978 = vmatpush3.bf16.msra.mxu1 %v1042_v18  ;;  %971 = vmatprep.subr.bf16.mxu0 %v1158_v19  ;;  %v940_v31 = vld [vmem:[%s1443_s5] ss:$0 sm:$0xff]  ;;  %s938_s29 = sshll.u32 %s1479_s13, 3 }
  0x5e   : > { %979 = vmatprep.subr.bf16.mxu1 %v1158_v19  ;;  %981 = vmatprep.mubr.msk.bf16.mxu1 %vm1159_vm8, %v1158_v19  ;;  %v941_v38 = vld [vmem:[%s1441_s3] ss:$0 sm:$0xff]  ;;  %v942_v39 = vld [vmem:[#allocation5 + $0x1] ss:$0 sm:$0xff]  ;;  %v943_v44 = vld [vmem:[#allocation5 + $0x2] ss:$0 sm:$0xff] }
  0x5f   : > { %972 = vmatpush3.bf16.msra.mxu0 %v1043_v20  ;;  %v944_v49 = vld [vmem:[#allocation5 + $0x3] ss:$0 sm:$0xff]  ;;  %v945_v53 = vld [vmem:[#allocation5 + $0x4] ss:$0 sm:$0xff]  ;;  %v946_v58 = vld [vmem:[#allocation5 + $0x5] ss:$0 sm:$0xff] }
  0x60   : > { %560 = vperm.xlu1 %1039, %v558_v6   ;;  %v947_v0 = vld [vmem:[#allocation5 + $0x6] ss:$0 sm:$0xff]  ;;  %v948_v5 = vld [vmem:[#allocation5 + $0x7] ss:$0 sm:$0xff]  ;;  %s1473_s20 = sld [smem:[#allocation11_spill]]  ;;  %vm852_vm2 = vcmask 7168  }
  0x61   : > { %980 = vmatpush3.bf16.msra.mxu1 %v1044_v21 }
  0x64   : > { %590 = vperm.xlu1 %1039, %v588_v8  }
  0x66   : > { %s496_s25 = scalar_lea.vmem %s1473_s20, %s938_s29 }
  0x68   : > { %605 = vperm.xlu1 %1039, %v603_v9  }
  0x6c   : > { %620 = vperm.xlu1 %1039, %v618_v10  }
  0x70   : > { %635 = vperm.xlu1 %1039, %v633_v11  }
  0xdb   : > { %v546_v24 = vpop.permute.xlu1 %545 }
  0xdc   : > { %vm547_vm9 = vcmp.eq.s32.totalorder %v546_v24, 1 }
  0xdf   : > { %v561_v26 = vpop.permute.xlu1 %560 }
  0xe0   : > { %vm562_vm10 = vcmp.eq.s32.totalorder %v561_v26, 1 }
  0xe3   : > { %v591_v27 = vpop.permute.xlu1 %590 }
  0xe4   : > { %vm592_vm12 = vcmp.eq.s32.totalorder %v591_v27, 1 }
  0xe7   : > { %v606_v34 = vpop.permute.xlu1 %605 }
  0xe8   : > { %vm607_vm13 = vcmp.eq.s32.totalorder %v606_v34, 1 }
  0xe9   : > { %v505_v12 = vpop.xlane.xlu0 %504 }
  0xea   : > { %v507_v13 = vmul.f32 0.03125, %v505_v12 }
  0xeb   : > { %v621_v42 = vpop.permute.xlu1 %620 }
  0xec   : > { %v508_v14 = vsub.f32 %v1369_v1, %v507_v13  ;;  %vm622_vm14 = vcmp.eq.s32.totalorder %v621_v42, 1 }
  0xee   : > { %v509_v15 = vmul.f32 %v508_v14, %v508_v14 }
  0xef   : > { %v636_v60 = vpop.permute.xlu1 %635 }
  0xf0   : > { %v510_v16 = vsel %vm502_vm0, %v509_v15, 0.0  ;;  %vm637_vm15 = vcmp.eq.s32.totalorder %v636_v60, 1 }
  0xf1   : > { %511 = vadd.xlane.f32.xlu0 %v510_v16 }
 0x107   : > { %575 = vperm.xlu0 %1040, %v573_v7  }
 0x17e   : > { %v512_v22 = vpop.xlane.xlu0 %511 }
 0x17f   : > { %v513_v23 = vmul.f32 0.03125, %v512_v22 }
 0x181   : > { %v514_v25 = vadd.f32 1e-05, %v513_v23 }
 0x183   : > { %1045 = vrsqrt.f32 %v514_v25 }
 0x186   : > { %v576_v35 = vpop.permute.xlu0 %575 }
 0x187   : > { %vm577_vm11 = vcmp.eq.s32.totalorder %v576_v35, 1 }
 0x18d   : > { %v1046_v28 = vpop.eup %1045 }
 0x18e   : > { %v516_v30 = vmul.f32 %v1046_v28, %v508_v14 }
 0x190   : > { %v523_v32 = vmul.f32 %v939_v29, %v516_v30 }
 0x192   : > { %v530_v33 = vadd.f32 %v940_v31, %v523_v32  ;;  %v1160_v32 = vmov -1.0  }
 0x194   : > { %v540_v36 = vrot.slane %v530_v33, 7  ;;  %v555_v37 = vrot.slane %v530_v33, 6  ;;  %v570_v40 = vrot.slane %v530_v33, 5  ;;  %v585_v41 = vrot.slane %v530_v33, 4 }
 0x195   : > { %v539_v46 = vmul.f32 %v941_v38, %v530_v33  ;;  %v600_v48 = vrot.slane %v530_v33, 3  ;;  %v615_v55 = vrot.slane %v530_v33, 2  ;;  %v630_v61 = vrot.slane %v530_v33, 1 }
 0x196   : > { %v548_v43 = vsel %vm547_vm9, %v540_v36, 0.0  ;;  %v563_v45 = vsel %vm562_vm10, %v555_v37, 0.0  ;;  %v578_v50 = vsel %vm577_vm11, %v570_v40, 0.0  ;;  %v593_v54 = vsel %vm592_vm12, %v585_v41, 0.0 }
 0x197   : > { %v553_v47 = vmul.f32 %v942_v39, %v548_v43  ;;  %v568_v52 = vmul.f32 %v943_v44, %v563_v45  ;;  %v583_v57 = vmul.f32 %v944_v49, %v578_v50  ;;  %v608_v59 = vsel %vm607_vm13, %v600_v48, 0.0  ;;  %v953_v39 = vld [vmem:[%s1447_s9] ss:$0 sm:$0xff] }
 0x198   : > { %v598_v62 = vmul.f32 %v945_v53, %v593_v54  ;;  %v623_v2 = vsel %vm622_vm14, %v615_v55, 0.0  ;;  %v613_v3 = vmul.f32 %v946_v58, %v608_v59  ;;  %v638_v6 = vsel %vm637_vm15, %v630_v61, 0.0 }
 0x199   : > { %v554_v51 = vadd.f32 %v553_v47, %v539_v46  ;;  %v628_v7 = vmul.f32 %v947_v0, %v623_v2  ;;  %v643_v9 = vmul.f32 %v948_v5, %v638_v6  ;;  %v959_v5 = vld [vmem:[%s1449_s11] ss:$0 sm:$0xff] }
 0x19b   : > { %v569_v56 = vadd.f32 %v568_v52, %v554_v51  ;;  %v949_v52 = vld [vmem:[%s1446_s8] ss:$0 sm:$0xff] }
 0x19d   : > { %v584_v63 = vadd.f32 %v583_v57, %v569_v56 }
 0x19f   : > { %v599_v4 = vadd.f32 %v598_v62, %v584_v63 }
 0x1a1   : > { %v614_v8 = vadd.f32 %v613_v3, %v599_v4 }
 0x1a3   : > { %v629_v10 = vadd.f32 %v628_v7, %v614_v8  ;;  %v960_v7 = vld [vmem:[%s1450_s12] ss:$0 sm:$0xff] }
 0x1a5   : > { %v644_v11 = vadd.f32 %v643_v9, %v629_v10 }
 0x1a7   : > { %v646_v12 = vmul.f32 0.70710677, %v644_v11  ;;  %v645_v35 = vmul.f32 0.5, %v644_v11  ;;  %v850_v11 = vstv %s849_s28 }
 0x1a9   : > { %v649_v13 = vand.u32 2147483647, %v646_v12  ;;  %vm647_vm1 = vcmp.ge.f32.partialorder %v646_v12, 0.0 }
 0x1aa   : > { %v648_v33 = vsel %vm647_vm1, 1.0, %v1160_v32 }
 0x1ab   : > { %v650_v14 = vmul.f32 0.3275911, %v649_v13  ;;  %v662_v16 = vsub.f32 0.0, %v649_v13 }
 0x1ad   : > { %v651_v15 = vadd.f32 1.0, %v650_v14  ;;  %v663_v18 = vmul.f32 %v662_v16, %v649_v13 }
 0x1af   : > { %1047 = vrcp.f32 %v651_v15  ;;  %v664_v21 = vmul.f32 1.442695, %v663_v18 }
 0x1b1   : > { %1049 = vpow2.f32 %v664_v21 }
 0x1b9   : > { %v1048_v17 = vpop.eup %1047 }
 0x1ba   : > { %v653_v19 = vmul.f32 1.0614054, %v1048_v17 }
 0x1bb   : > { %v1050_v29 = vpop.eup %1049 }
 0x1bc   : > { %v654_v20 = vadd.f32 -1.4531521, %v653_v19 }
 0x1be   : > { %v655_v22 = vmul.f32 %v1048_v17, %v654_v20 }
 0x1c0   : > { %v656_v23 = vadd.f32 1.4214138, %v655_v22 }
 0x1c2   : > { %v657_v24 = vmul.f32 %v1048_v17, %v656_v23 }
 0x1c4   : > { %v658_v25 = vadd.f32 -0.28449672, %v657_v24 }
 0x1c6   : > { %v659_v26 = vmul.f32 %v1048_v17, %v658_v25 }
 0x1c8   : > { %v660_v27 = vadd.f32 0.2548296, %v659_v26 }
 0x1ca   : > { %v661_v28 = vmul.f32 %v1048_v17, %v660_v27 }
 0x1cc   : > { %v666_v30 = vmul.f32 %v1050_v29, %v661_v28 }
 0x1ce   : > { %v667_v31 = vsub.f32 1.0, %v666_v30 }
 0x1d0   : > { %v668_v34 = vmul.f32 %v667_v31, %v648_v33 }
 0x1d2   : > { %v669_v36 = vadd.f32 1.0, %v668_v34 }
 0x1d4   : > { %v670_v37 = vmul.f32 %v669_v36, %v645_v35 }
 0x1d6   : > { %v671_v38 = vpack.c.bf16 %v670_v37, %v670_v37 }
 0x1d8   : > { %974 = vmatmul.mubr.msk.bf16.vlgmr.msra.gmra.mrb[0].mxu0 %vm502_vm0, %v671_v38  ;;  %982 = vmatmul.mubr.msk.bf16.vlgmr.msra.gmra.mrb[0].mxu1 %vm502_vm0, %v671_v38 }
 0x2ab   : > { %v732_v40 = vpop.f32.mrb[0].mxu0  ;;  %v795_v41 = vpop.f32.mrb[0].mxu1 }
 0x2ac   : > { %v796_v42 = vadd.f32 %v953_v39, %v795_v41  ;;  %v975_v43 = vpop.f32.mrb[1].mxu0  ;;  %v983_v44 = vpop.f32.mrb[1].mxu1  ;;  %v733_v53 = vadd.f32 %v949_v52, %v732_v40 }
 0x2ad   : > { %v735_v45 = vpop.f32.mrb[2].mxu0  ;;  %v798_v46 = vpop.f32.mrb[2].mxu1 }
 0x2ae   : > { %v957_v47 = vmul.f32 -1.442695, %v796_v42  ;;  %v976_v48 = vpop.f32.mrb[3].mxu0  ;;  %v984_v49 = vpop.f32.mrb[3].mxu1 }
 0x2b0   : > { %1051 = vpow2.f32 %v957_v47 }
 0x2ba   : > { %v1052_v50 = vpop.eup %1051 }
 0x2bb   : > { %v804_v51 = vadd.f32 1.0, %v1052_v50 }
 0x2bd   : > { %1053 = vrcp.f32 %v804_v51 }
 0x2c7   : > { %v1054_v54 = vpop.eup %1053 }
 0x2c8   : > { %v807_v55 = vmul.f32 %v1054_v54, %v733_v53 }
 0x2ca   : > { %v808_v56 = vadd.f32 %v807_v55, %v1369_v1  ;;  %v958_v1 = vld [vmem:[%s1448_s10] ss:$0 sm:$0xff] }
 0x2cc   : > { %v811_v57 = vsel %vm502_vm0, %v808_v56, 0.0 }
 0x2cd   : > { %812 = vadd.xlane.f32.xlu1 %v811_v57 }
 0x35a   : > { %v813_v58 = vpop.xlane.xlu1 %812 }
 0x35b   : > { %v814_v59 = vmul.f32 0.03125, %v813_v58 }
 0x35d   : > { %v815_v60 = vsub.f32 %v808_v56, %v814_v59 }
 0x35f   : > { %v816_v61 = vmul.f32 %v815_v60, %v815_v60 }
 0x361   : > { %v817_v62 = vsel %vm502_vm0, %v816_v61, 0.0 }
 0x362   : > { %818 = vadd.xlane.f32.xlu0 %v817_v62 }
 0x3ef   : > { %v819_v63 = vpop.xlane.xlu0 %818 }
 0x3f0   : > { %v820_v0 = vmul.f32 0.03125, %v819_v63 }
 0x3f2   : > { %v821_v2 = vadd.f32 1e-05, %v820_v0 }
 0x3f4   : > { %1055 = vrsqrt.f32 %v821_v2 }
 0x3fe   : > { %v1056_v3 = vpop.eup %1055 }
 0x3ff   : > { %v823_v4 = vmul.f32 %v1056_v3, %v815_v60 }
 0x401   : > { %v830_v6 = vmul.f32 %v958_v1, %v823_v4 }
 0x403   : > { %v837_v8 = vadd.f32 %v959_v5, %v830_v6 }
 0x405   : > { %v845_v9 = vmul.f32 %v960_v7, %v837_v8 }
 0x407   : > { %v846_v10 = vsel %vm502_vm0, %v845_v9, 0.0 }
 0x408   : > { %847 = vadd.xlane.f32.xlu1 %v846_v10 }
 0x495   : > { %v848_v12 = vpop.xlane.xlu1 %847 }
 0x496   : > { %v851_v13 = vadd.f32 %v850_v11, %v848_v12 }
 0x498   : > { %853 = vst.msk [vmem:[%s496_s25] sm:$0xff] %vm852_vm2, %v851_v13 }
 0x499 PF: > { %s1474_s18 = sld [smem:[#allocation9_spill]]  ;;  %s1475_s15 = smov %s1145_s16 }
 0x49a   : > { %s1476_s16 = smov %s1149_s17  ;;  %s1477_s17 = smov %s1313_s14 }
 0x49f   : > { %p26_p10 = scmp.ge.s32.totalorder %s1474_s18, 4  }
 0x4a1   :  { %28 = sbr.rel (!%p26_p10) target bundleno = 8 (0x8), region = 120 }
 0x4a8   :  { %873 = vsyncpa [#allocation4], 1 }
 0x4a9   :  { %875 = vsyncpa [#allocation4 + $0x1], 1 }
 0x4aa   :  { %876 = vsyncpa [#allocation6], 1 }

</bundles_post_ra>
